<compile_context>
chip_gen: v6e
topology: v6e:2x2x1
jax: 0.10.0
libtpu: 0.0.40
codegen_flags: <defaults>
</compile_context>

<pallas_src>
import functools
import math

import jax
import jax.numpy as jnp
from jax.experimental import pallas as pl
from jax.experimental.pallas import tpu as pltpu


def attention_kernel(x_ref, mask_ref, w_ref, b_ref, o_ref, *,
                     group_heads, head_dim):
    x = x_ref[0]          # (S, H) bf16
    mask = mask_ref[0]    # (1, S) f32 additive mask
    S = x.shape[0]
    gd = group_heads * head_dim

    # --- fused per-group QKV projection: one MXU pass (K=H, N=3*gd), f32 acc.
    # The 1/sqrt(head_dim) score scale is already folded into the q columns. ---
    qkv = jnp.dot(x, w_ref[...], preferred_element_type=jnp.float32) + b_ref[...]

    # Slice q/k/v on the lane-dense 2-D layout, cast, then expose the head dim.
    q = qkv[:, 0 * gd:1 * gd].astype(jnp.bfloat16).reshape(S, group_heads, head_dim)
    k = qkv[:, 1 * gd:2 * gd].astype(jnp.bfloat16).reshape(S, group_heads, head_dim)
    v = qkv[:, 2 * gd:3 * gd].astype(jnp.bfloat16).reshape(S, group_heads, head_dim)

    # --- scores for this head group: one batched contraction over d (no
    # materialized transpose of k). ---
    s = jnp.einsum("qhd,khd->hqk", q, k,
                   preferred_element_type=jnp.float32)          # (G, S, S) f32
    s = s + mask                                                 # (1,S) -> (G,S,S), single broadcast

    # --- numerically stable softmax; normalization deferred to after PV ---
    m = jnp.max(s, axis=-1, keepdims=True)
    p = jnp.exp(s - m)                                           # f32, values <= 1
    # TODO(synk): on v6e/v7x a bf16 exp (keeping the row-sum in f32) halves EUP
    # occupancy; kept f32 here so the same kernel is not a pessimization on v5e.
    rowsum = jnp.sum(p, axis=-1, keepdims=True)                  # (G, S, 1) f32

    # --- context: batched PV with UNNORMALIZED probs, then normalize the small
    # (G,S,d) result with an EUP reciprocal (instead of dividing the (G,S,S)
    # prob matrix). ---
    ctx = jnp.einsum("hqk,khd->hqd", p.astype(jnp.bfloat16), v,
                     preferred_element_type=jnp.float32)         # (G, S, d) f32
    ctx = ctx * pl.reciprocal(rowsum, approx=True)

    # Merge this group's heads and do a single lane-dense store of its columns.
    o_ref[0] = jnp.transpose(ctx, (1, 0, 2)).reshape(S, gd).astype(o_ref.dtype)


def _pick_group_heads(num_heads, head_dim):
    """Smallest divisor G of num_heads with G*head_dim >= 128 (lane-dense)."""
    for g in range(1, num_heads + 1):
        if num_heads % g == 0 and g * head_dim >= 128:
            return g
    return num_heads


def super_bert_self_attention(hidden_states, attention_mask, params, *,
                              num_heads, group_heads=None, vmem_limit_bytes=None):
    """hidden_states: (B, S, H); attention_mask: (B, 1, S) additive mask."""
    B, S, H = hidden_states.shape
    assert H % num_heads == 0
    head_dim = H // num_heads
    if group_heads is None:
        group_heads = _pick_group_heads(num_heads, head_dim)
    assert num_heads % group_heads == 0
    num_groups = num_heads // group_heads
    gd = group_heads * head_dim
    scale = 1.0 / math.sqrt(head_dim)

    # Fold the score scaling into the query projection (mathematically identical
    # to dividing the scores by sqrt(head_dim)).  Lay weights out as (H, 3H)
    # with per-group columns [q_g | k_g | v_g] contiguous, so each grid step
    # DMAs exactly one (H, 3*gd) block and runs a single fused QKV matmul.
    def per_group(w):                       # (H, H) -> (H, num_groups, gd)
        return w.reshape(H, num_groups, gd)

    w_qkv = jnp.concatenate(
        [per_group(params["wq"] * scale), per_group(params["wk"]),
         per_group(params["wv"])], axis=-1).reshape(H, 3 * H).astype(jnp.bfloat16)
    b_qkv = jnp.concatenate(
        [(params["bq"] * scale).reshape(1, num_groups, gd),
         params["bk"].reshape(1, num_groups, gd),
         params["bv"].reshape(1, num_groups, gd)],
        axis=-1).reshape(1, 3 * H).astype(jnp.float32)

    x_bf16 = hidden_states.astype(jnp.bfloat16)
    mask = attention_mask.astype(jnp.float32)

    kernel = functools.partial(attention_kernel,
                               group_heads=group_heads, head_dim=head_dim)

    out_itemsize = jnp.dtype(hidden_states.dtype).itemsize
    cost = pl.CostEstimate(
        flops=int(B * (2 * S * H * 3 * H + 4 * num_heads * S * S * head_dim)),
        transcendentals=int(B * num_heads * S * S),
        bytes_accessed=int(x_bf16.size * 2 + mask.size * 4 + w_qkv.size * 2
                           + b_qkv.size * 4 + B * S * H * out_itemsize))

    return pl.pallas_call(
        kernel,
        out_shape=jax.ShapeDtypeStruct((B, S, H), hidden_states.dtype),
        grid=(B, num_groups),
        in_specs=[
            pl.BlockSpec((1, S, H), lambda b, g: (b, 0, 0)),      # hidden states (per batch)
            pl.BlockSpec((1, 1, S), lambda b, g: (b, 0, 0)),      # additive mask (per batch)
            pl.BlockSpec((H, 3 * gd), lambda b, g: (0, g)),       # fused QKV weights (per group)
            pl.BlockSpec((1, 3 * gd), lambda b, g: (0, g)),       # fused QKV bias (per group)
        ],
        out_specs=pl.BlockSpec((1, S, gd), lambda b, g: (b, 0, g)),
        compiler_params=pltpu.CompilerParams(
            dimension_semantics=("parallel", "parallel"),
            vmem_limit_bytes=vmem_limit_bytes),
        cost_estimate=cost,
    )(x_bf16, mask, w_qkv, b_qkv)


# ---------------- pure-JAX f32 reference (for correctness check) ----------------
def reference_attention(x, attention_mask, p, *, num_heads):
    B, S, H = x.shape
    d = H // num_heads
    lin = lambda t, w, b: t @ w + b

    q = lin(x, p["wq"], p["bq"]).reshape(B, S, num_heads, d).transpose(0, 2, 1, 3)
    k = lin(x, p["wk"], p["bk"]).reshape(B, S, num_heads, d).transpose(0, 2, 1, 3)
    v = lin(x, p["wv"], p["bv"]).reshape(B, S, num_heads, d).transpose(0, 2, 1, 3)

    s = jnp.einsum("bhqd,bhkd->bhqk", q, k) / jnp.sqrt(jnp.float32(d))
    s = s + attention_mask[:, None]                     # (B,1,1,S) broadcast
    probs = jax.nn.softmax(s, axis=-1)
    ctx = jnp.einsum("bhqk,bhkd->bhqd", probs, v)
    return ctx.transpose(0, 2, 1, 3).reshape(B, S, H)


if __name__ == "__main__":
    # Small config consistent with the module: hidden_size=32,
    # num_attention_heads=4, batch=2, seq=8.
    B, S, H, NH = 2, 8, 32, 4

    key = jax.random.PRNGKey(0)
    keys = jax.random.split(key, 8)

    def w(k, shape, scl=0.05):
        return (scl * jax.random.normal(k, shape)).astype(jnp.float32)

    params = {
        "wq": w(keys[0], (H, H)), "bq": w(keys[1], (1, H)),
        "wk": w(keys[2], (H, H)), "bk": w(keys[3], (1, H)),
        "wv": w(keys[4], (H, H)), "bv": w(keys[5], (1, H)),
    }

    x = jax.random.normal(keys[6], (B, S, H), dtype=jnp.float32)
    # additive attention mask: 0 for visible, -10000 for masked (last 2 keys of batch 1)
    mask = jnp.zeros((B, 1, S), dtype=jnp.float32)
    mask = mask.at[1, 0, -2:].set(-10000.0)

    out = super_bert_self_attention(x, mask, params, num_heads=NH)
    out = jax.block_until_ready(out)

    ref = reference_attention(x, mask, params, num_heads=NH)
    assert out.shape == (B, S, H)
    err = float(jnp.max(jnp.abs(out - ref)))
    # bf16 MXU inputs + f32 accumulation + approx reciprocal: bf16-level tolerance.
    assert jnp.allclose(out, ref, rtol=5e-3, atol=5e-3), f"max abs err = {err}"

    print("KERNEL_OK")
</pallas_src>

<mosaic_0001>
module attributes {stable_mosaic.version = 11 : i64} {
  func.func @attention_kernel(%arg0: i32, %arg1: i32, %arg2: memref<1x8x32xbf16, #tpu.memory_space<vmem>>, %arg3: memref<1x1x8xf32, #tpu.memory_space<vmem>>, %arg4: memref<32x96xbf16, #tpu.memory_space<vmem>>, %arg5: memref<1x96xf32, #tpu.memory_space<vmem>>, %arg6: memref<1x8x32xf32, #tpu.memory_space<vmem>>) attributes {dimension_semantics = [#tpu.dimension_semantics<parallel>, #tpu.dimension_semantics<parallel>], iteration_bounds = array<i64: 2, 1>, scalar_prefetch = 0 : i64, scratch_operands = 0 : i64, tpu.core_type = #tpu.core_type<tc>, window_params = [{transform_indices = @transform_0, window_bounds = array<i64: 1, 8, 32>}, {transform_indices = @transform_1, window_bounds = array<i64: 1, 1, 8>}, {transform_indices = @transform_2, window_bounds = array<i64: 32, 96>}, {transform_indices = @transform_3, window_bounds = array<i64: 1, 96>}, {transform_indices = @transform_4, window_bounds = array<i64: 1, 8, 32>}]} {
    %c0 = arith.constant 0 : index
    %c0_0 = arith.constant 0 : index
    %c0_1 = arith.constant 0 : index
    %0 = vector.load %arg2[%c0, %c0_0, %c0_1] : memref<1x8x32xbf16, #tpu.memory_space<vmem>>, vector<1x8x32xbf16>
    %1 = vector.shape_cast %0 : vector<1x8x32xbf16> to vector<8x32xbf16>
    %c0_2 = arith.constant 0 : index
    %c0_3 = arith.constant 0 : index
    %c0_4 = arith.constant 0 : index
    %2 = vector.load %arg3[%c0_2, %c0_3, %c0_4] : memref<1x1x8xf32, #tpu.memory_space<vmem>>, vector<1x1x8xf32>
    %3 = vector.shape_cast %2 : vector<1x1x8xf32> to vector<1x8xf32>
    %c0_5 = arith.constant 0 : index
    %c0_6 = arith.constant 0 : index
    %4 = vector.load %arg4[%c0_5, %c0_6] : memref<32x96xbf16, #tpu.memory_space<vmem>>, vector<32x96xbf16>
    %cst = arith.constant dense<0.000000e+00> : vector<8x96xf32>
    %5 = tpu.matmul %1, %4, %cst {dimension_numbers = #tpu.dot_dimension_numbers<[1], [0], [0], [1], [0, 0, 1, 1], [], []>} : vector<8x32xbf16>, vector<32x96xbf16>, vector<8x96xf32> -> vector<8x96xf32>
    %c0_7 = arith.constant 0 : index
    %c0_8 = arith.constant 0 : index
    %6 = vector.load %arg5[%c0_7, %c0_8] : memref<1x96xf32, #tpu.memory_space<vmem>>, vector<1x96xf32>
    %7 = vector.broadcast %6 : vector<1x96xf32> to vector<8x96xf32>
    %8 = arith.addf %5, %7 : vector<8x96xf32>
    %9 = vector.extract_strided_slice %8 {offsets = [0, 0], sizes = [8, 32], strides = [1, 1]} : vector<8x96xf32> to vector<8x32xf32>
    %10 = arith.truncf %9 : vector<8x32xf32> to vector<8x32xbf16>
    %11 = vector.shape_cast %10 : vector<8x32xbf16> to vector<8x4x8xbf16>
    %12 = vector.extract_strided_slice %8 {offsets = [0, 32], sizes = [8, 32], strides = [1, 1]} : vector<8x96xf32> to vector<8x32xf32>
    %13 = arith.truncf %12 : vector<8x32xf32> to vector<8x32xbf16>
    %14 = vector.shape_cast %13 : vector<8x32xbf16> to vector<8x4x8xbf16>
    %15 = vector.extract_strided_slice %8 {offsets = [0, 64], sizes = [8, 32], strides = [1, 1]} : vector<8x96xf32> to vector<8x32xf32>
    %16 = arith.truncf %15 : vector<8x32xf32> to vector<8x32xbf16>
    %17 = vector.shape_cast %16 : vector<8x32xbf16> to vector<8x4x8xbf16>
    "tpu.trace_start"() <{level = 10 : i32, message = "qhd,khd->hqk"}> : () -> ()
    %cst_9 = arith.constant dense<0.000000e+00> : vector<4x8x8xf32>
    %18 = tpu.matmul %11, %14, %cst_9 {dimension_numbers = #tpu.dot_dimension_numbers<[2], [2], [0], [0], [0, 1, 0, 0, 1, 0], [1], [1]>} : vector<8x4x8xbf16>, vector<8x4x8xbf16>, vector<4x8x8xf32> -> vector<4x8x8xf32>
    "tpu.trace_stop"() : () -> ()
    %19 = vector.shape_cast %3 : vector<1x8xf32> to vector<1x1x8xf32>
    %20 = vector.broadcast %19 : vector<1x1x8xf32> to vector<4x8x8xf32>
    %21 = arith.addf %18, %20 : vector<4x8x8xf32>
    %cst_10 = arith.constant dense<0xFF800000> : vector<4x8xf32>
    %22 = vector.multi_reduction <maximumf>, %21, %cst_10 [2] : vector<4x8x8xf32> to vector<4x8xf32>
    %23 = vector.shape_cast %22 : vector<4x8xf32> to vector<4x8x1xf32>
    %24 = vector.broadcast %23 : vector<4x8x1xf32> to vector<4x8x8xf32>
    %25 = arith.subf %21, %24 : vector<4x8x8xf32>
    %26 = math.exp %25 : vector<4x8x8xf32>
    %cst_11 = arith.constant dense<0.000000e+00> : vector<4x8xf32>
    %27 = vector.multi_reduction <add>, %26, %cst_11 [2] : vector<4x8x8xf32> to vector<4x8xf32>
    %28 = vector.shape_cast %27 : vector<4x8xf32> to vector<4x8x1xf32>
    %29 = arith.truncf %26 : vector<4x8x8xf32> to vector<4x8x8xbf16>
    "tpu.trace_start"() <{level = 10 : i32, message = "hqk,khd->hqd"}> : () -> ()
    %cst_12 = arith.constant dense<0.000000e+00> : vector<4x8x8xf32>
    %30 = tpu.matmul %29, %17, %cst_12 {dimension_numbers = #tpu.dot_dimension_numbers<[2], [0], [1], [2], [0, 0, 0, 1, 1, 2], [0], [1]>} : vector<4x8x8xbf16>, vector<8x4x8xbf16>, vector<4x8x8xf32> -> vector<4x8x8xf32>
    "tpu.trace_stop"() : () -> ()
    %31 = tpu.reciprocal %28 {approx = true} : vector<4x8x1xf32> -> vector<4x8x1xf32>
    %32 = vector.broadcast %31 : vector<4x8x1xf32> to vector<4x8x8xf32>
    %33 = arith.mulf %30, %32 : vector<4x8x8xf32>
    %34 = tpu.transpose %33, [1, 0, 2] : vector<4x8x8xf32> -> vector<8x4x8xf32>
    %35 = vector.shape_cast %34 : vector<8x4x8xf32> to vector<8x32xf32>
    %c0_13 = arith.constant 0 : index
    %c0_14 = arith.constant 0 : index
    %c0_15 = arith.constant 0 : index
    %36 = vector.load %arg6[%c0_13, %c0_14, %c0_15] : memref<1x8x32xf32, #tpu.memory_space<vmem>>, vector<1x8x32xf32>
    %37 = vector.shape_cast %36 : vector<1x8x32xf32> to vector<8x32xf32>
    %38 = vector.shape_cast %35 : vector<8x32xf32> to vector<1x8x32xf32>
    tpu.vector_store %arg6[%c0_13, %c0_14, %c0_15], %38 {strides = array<i32>} : memref<1x8x32xf32, #tpu.memory_space<vmem>>, vector<1x8x32xf32>,
    return
  }
  func.func @transform_0(%arg0: i32, %arg1: i32) -> (i32, i32, i32) {
    %c0_i32 = arith.constant 0 : i32
    %c0_i32_0 = arith.constant 0 : i32
    %c0_i32_1 = arith.constant 0 : i32
    return %arg0, %c0_i32, %c0_i32_0 : i32, i32, i32
  }
  func.func @transform_1(%arg0: i32, %arg1: i32) -> (i32, i32, i32) {
    %c0_i32 = arith.constant 0 : i32
    %c0_i32_0 = arith.constant 0 : i32
    %c0_i32_1 = arith.constant 0 : i32
    return %arg0, %c0_i32, %c0_i32_0 : i32, i32, i32
  }
  func.func @transform_2(%arg0: i32, %arg1: i32) -> (i32, i32) {
    %c0_i32 = arith.constant 0 : i32
    %c0_i32_0 = arith.constant 0 : i32
    return %c0_i32, %arg1 : i32, i32
  }
  func.func @transform_3(%arg0: i32, %arg1: i32) -> (i32, i32) {
    %c0_i32 = arith.constant 0 : i32
    %c0_i32_0 = arith.constant 0 : i32
    return %c0_i32, %arg1 : i32, i32
  }
  func.func @transform_4(%arg0: i32, %arg1: i32) -> (i32, i32, i32) {
    %c0_i32 = arith.constant 0 : i32
    %c0_i32_0 = arith.constant 0 : i32
    return %arg0, %c0_i32, %arg1 : i32, i32, i32
  }
}

</mosaic_0001>

<bundles_post_ra>
// kernel: tpu_custom_call.1
= control target key start
LH: loop header
LB: loop body
LE: loop exit
PB: predicated region body
PF: predicated region fallthrough
CT: control target
= control target key end

     0   :  { %s1877_s0 = inlined_call_operand.hbm [shape: bf16[2,8,32], index: 0, kind: input, shape index: {}]   ;;  %s1878_s1 = inlined_call_operand.hbm [shape: f32[2,1,8], index: 1, kind: input, shape index: {}]   ;;  %s1879_s2 = inlined_call_operand.hbm [shape: bf16[32,96], index: 2, kind: input, shape index: {}]   ;;  %s1880_s3 = inlined_call_operand.vmem [shape: f32[1,96], index: 3, kind: input, shape index: {}]   ;;  %s1881_s4 = inlined_call_operand.hbm [shape: f32[2,8,32], index: 4, kind: output, shape index: {}]  }
   0x1   :  { %1883 = sst [smem:[#allocation15_spill]] %s1877_s0 }
   0x2   :  { %1884 = sst [smem:[#allocation16_spill]] %s1879_s2 }
   0x3   :  { %9 = vsyncpa [#allocation3], 0 }
   0x4   :  { %11 = vsyncpa [#allocation3 + $0x1], 0 }
   0x5   :  { %12 = vsyncpa [#allocation6], 0 }
   0x6   :  { %14 = vsyncpa [#allocation6 + $0x1], 0 }
   0x7   :  { %15 = vsyncpa [#allocation4], 0 }
   0x8   :  { %17 = vsyncpa [#allocation4 + $0x1], 0  ;;  %s1606_s15 = smov 0   ;;  %s1608_s16 = smov 0  }
   0x9   :  { %s1610_s17 = smov 0   ;;  %s1612_s18 = smov 0  }
   0xa   :  { %s1614_s19 = smov 0   ;;  %s1616_s20 = smov 0  }
   0xb LB: > { %s1637_s21 = sadd.s32 4294967295, %s1561_s20   ;;  %s1174_s22 = sadd.s32 4294967294, %s1561_s20   ;;  %s1561_s20 = sphi %s1616_s20, %s23_s20   ;;  %s1557_s19 = sphi %s1614_s19, %s1904_s19   ;;  %s1553_s18 = sphi %s1612_s18, %s1903_s18   ;;  %s1549_s17 = sphi %s1610_s17, %s1902_s17   ;;  %s1545_s16 = sphi %s1608_s16, %s1901_s16   ;;  %s1541_s15 = sphi %s1606_s15, %s1900_s15  }
   0xc   : > { %p55_p0 = scmp.ne.s32.totalorder %s1545_s16, %s1541_s15  ;;  %p56_p1 = scmp.eq.s32.totalorder %s1637_s21, 0 }
   0xd   : > { %p165_p3 = scmp.eq.s32.totalorder %s1174_s22, 1  ;;  %p1175_p5 = scmp.ge.s32.totalorder %s1561_s20, 1 }
   0xe   : > { %p1646_p4 = por %p56_p1, %p55_p0  ;;  %p172_p7 = scmp.lt.s32.totalorder %s1561_s20, 3 }
   0xf   : > { %p1651_p6 = por %p165_p3, %p55_p0  ;;  %s1563_s26 = smov [#allocation7]  }
  0x10   : > { %p1656_p8 = pnand %p1175_p5, %p172_p7  ;;  %s186_s27 = sshll.u32 %s1563_s26, 4  ;;  %s187_s27 = int_to_ptr.vmem [resolvable:$true] %s186_s27 }
  0x11   : > { %s1886_s24 = scalar_select %p1651_p6, 1, 0 }
  0x12   : > { %p1290_p9 = pneg %p1656_p8  ;;  %p1178_p10 = scmp.ge.s32.totalorder %s1561_s20, 2 }
  0x13   : > { %s35_s29 = sadd.s32 1, %s1557_s19  ;;  %s1402_s30 = scalar_lea.vmem %s187_s27, 256 }
  0x14   : > { %p1665_p11 = pnand %p1290_p9, %p56_p1  ;;  %p1403_p13 = scmp.ne.s32.totalorder %s187_s27, %s1402_s30 }
  0x15   : > { %p1410_p5 = scmp.lt.s32.totalorder %s187_s27, %s187_s27  ;;  %p1411_p7 = scmp.lt.s32.totalorder %s1402_s30, %s1402_s30 }
  0x16   : > { %p1393_p12 = pneg %p1665_p11 }
  0x17   : > { %p1412_p2 = por %p1411_p7, %p1410_p5 }
  0x18   : > { %p1405_p0 = pnand %p1403_p13, %p1393_p12 }
  0x1a   : > { %p1406_p3 = pneg %p1405_p0 }
  0x1c   : > { %p1413_p6 = pnand %p1412_p2, %p1406_p3 }
  0x1e   : > { %1416 = shalt.err (!%p1413_p6)
}
  0x1f   : > { %s1564_s5 = smov 64   ;;  %s1565_s6 = smov 4  }
  0x20   : > { %s1889_s2 = sld [smem:[#allocation16_spill]]  ;;  %p37_p2 = scmp.ge.s32.totalorder %s35_s29, 2 }
  0x21   : > { %s42_s9 = sadd.s32 1, %s1549_s17  ;;  %p49_p6 = scmp.ne.s32.totalorder %s1549_s17, %s1545_s16 }
  0x22   : > { %p50_p9 = scmp.eq.s32.totalorder %s1561_s20, 0  ;;  %s1906_s29 = smov (%p37_p2, %s35_s29), 0 }
  0x23   : > { %1890 = sst [smem:[#allocation13_spill]] %s1906_s29  ;;  %p1892_p13 = scmp.eq.s32.totalorder %s1637_s21, 1 }
  0x24   : > { %p1683_p12 = por %p50_p9, %p49_p6  ;;  %s39_s12 = ssub.s32 %s1557_s19, %s1906_s29 }
  0x25   : > { %p1689_p0 = por %p1892_p13, %p49_p6  ;;  %p40_p3 = scmp.eq.s32.totalorder %s39_s12, 0 }
  0x26   : > { %1293 = dma.hbm_to_vmem [thread:$0]  (!%p1665_p11), %s1889_s2, 256, %s187_s27, [#allocation6], %s1564_s5, %s1564_s5, %s1565_s6  }
  0x27   : > { %p1306_p11 = scmp.lt.s32.totalorder %s1561_s20, 2  ;;  %s206_s13 = sand.u32 1, %s1549_s17  }
  0x28   : > { %s1179_s14 = sshll.u32 %s206_s13, 2  ;;  %s1180_s26 = sshll.u32 %s1557_s19, 6 }
  0x29   : > { %s1698_s22 = scalar_select %p40_p3, %s1549_s17, %s42_s9  }
  0x2a   : > { %s1895_s0 = sld [smem:[#allocation15_spill]]  ;;  %s210_s5 = scalar_lea.vmem [#allocation2], %s1179_s14 }
  0x2b   : > { %1894 = sst [smem:[#allocation14_spill]] %s1698_s22  ;;  %s217_s6 = sshll.u32 %s210_s5, 4  ;;  %s218_s6 = int_to_ptr.vmem [resolvable:$true] %s217_s6 }
  0x2c   : > { %p1706_p5 = pnand %p1306_p11, %p1683_p12  ;;  %s224_s8 = sand.u32 1, %s1561_s20  }
  0x2d   : > { %s207_s12 = scalar_lea.sflag [#allocation3], %s206_s13  ;;  %s1430_s9 = scalar_lea.vmem %s218_s6, 64 }
  0x2e   : > { %p1419_p7 = pneg %p1706_p5  ;;  %p1431_p2 = scmp.ne.s32.totalorder %s218_s6, %s1430_s9 }
  0x2f   : > { %s1566_s14 = smov [#allocation2]  }
  0x30   : > { %s215_s30 = scalar_lea.hbm %s1895_s0, %s1180_s26  ;;  %p1433_p6 = pnand %p1431_p2, %p1419_p7 }
  0x31   : > { %s1435_s26 = sshll.u32 %s1566_s14, 4  ;;  %s1436_s26 = int_to_ptr.vmem [resolvable:$false] %s1435_s26 }
  0x32   : > { %p1434_p9 = pneg %p1433_p6  ;;  %s1437_s10 = scalar_lea.vmem %s1436_s26, 128 }
  0x33   : > { %p1438_p12 = scmp.lt.s32.totalorder %s218_s6, %s1436_s26  ;;  %p1439_p13 = scmp.lt.s32.totalorder %s1437_s10, %s1430_s9 }
  0x35   : > { %p1440_p11 = por %p1439_p13, %p1438_p12 }
  0x37   : > { %p1441_p3 = pnand %p1440_p11, %p1434_p9 }
  0x39   : > { %1444 = shalt.err (!%p1441_p3)
}
  0x3a   : > { %1297 = dma.hbm_to_vmem [thread:$0]  (!%p1706_p5), %s215_s30, 64, %s218_s6, %s207_s12  }
  0x3b   : > { %s1181_s27 = sshll.u32 %s1557_s19, 4  ;;  %s227_s28 = scalar_lea.vmem [#allocation5], %s206_s13 }
  0x3c   : > { %s234_s5 = sshll.u32 %s227_s28, 4  ;;  %s232_s29 = scalar_lea.hbm %s1878_s1, %s1181_s27  ;;  %s235_s5 = int_to_ptr.vmem [resolvable:$true] %s234_s5 }
  0x3d   : > { %s225_s14 = scalar_lea.sflag [#allocation6], %s224_s8  ;;  %s1458_s22 = scalar_lea.vmem %s235_s5, 16 }
  0x3e   : > { %p1459_p2 = scmp.ne.s32.totalorder %s235_s5, %s1458_s22  ;;  %s1567_s9 = smov [#allocation5]  }
  0x3f   : > { %s1463_s26 = sshll.u32 %s1567_s9, 4  ;;  %s1464_s26 = int_to_ptr.vmem [resolvable:$false] %s1463_s26 }
  0x40   : > { %p1461_p6 = pnand %p1459_p2, %p1419_p7  ;;  %s1465_s10 = scalar_lea.vmem %s1464_s26, 32 }
  0x41   : > { %p1466_p12 = scmp.lt.s32.totalorder %s235_s5, %s1464_s26  ;;  %p1467_p13 = scmp.lt.s32.totalorder %s1465_s10, %s1458_s22 }
  0x42   : > { %p1462_p9 = pneg %p1461_p6 }
  0x43   : > { %p1468_p11 = por %p1467_p13, %p1466_p12 }
  0x45   : > { %p1469_p3 = pnand %p1468_p11, %p1462_p9 }
  0x47   : > { %1472 = shalt.err (!%p1469_p3)
}
  0x48   : > { %1300 = dma.hbm_to_vmem [thread:$0]  (!%p1706_p5), %s232_s29, 16, %s235_s5, %s225_s14  }
  0x49   : > { %243 = sbr.rel (%p1656_p8) target bundleno = 1332 (0x534), region = 36  ;;  %s1730_s0 = sand.u32 (!%p1656_p8), 1, %s1545_s16  }
  0x4a   : > { %s1183_s2 = sshll.u32 (!%p1656_p8), %s1730_s0, 2  ;;  %s246_s13 = scalar_lea.sflag (!%p1656_p8), [#allocation3], %s1730_s0 }
  0x4b   : > { %s249_s30 = scalar_lea.vmem (!%p1656_p8), [#allocation2], %s1183_s2 }
  0x4e   : > { %1524 = dma.done.wait (%p1646_p4), %s246_s13, 64  }
  0x4f   : > { %1526 = vsyncadd (%p1646_p4), %s246_s13, 4294967232  ;;  %s254_s29 = sand.u32 1, %s1637_s21   ;;  %s257_s22 = scalar_lea.vmem [#allocation5], %s1730_s0 }
  0x50   : > { %s255_s25 = scalar_lea.sflag [#allocation6], %s254_s29 }
  0x51   : > { %1528 = dma.done.wait (%p1646_p4), %s255_s25, 16  }
  0x52   : > { %1530 = vsyncadd (%p1646_p4), %s255_s25, 4294967280 }
  0x53   : > { %1532 = dma.done.wait (%p56_p1), [#allocation6], 256  }
  0x54   : > { %1534 = vsyncadd (%p56_p1), [#allocation6], 4294967040  ;;  %v1568_v0 = vmov 0.0   ;;  %vm1569_vm0 = vmmov 0   ;;  %v1373_v1 = vld [vmem:[#allocation7 + $0x8] sm:$0xff]   ;;  %v1374_v2 = vld [vmem:[#allocation7] sm:$0xff]  }
  0x55   : > { %1224 = vmatprep.subr.bf16.mxu0 %v1568_v0  ;;  %1228 = vmatprep.mubr.msk.bf16.mxu0 %vm1569_vm0, %v1568_v0  ;;  %v297_v3 = vld [vmem:[%s249_s30] sm:$0xf]  ;;  %vm322_vm1 = vcmask 261120   ;;  %s1570_s6 = smov 104   ;;  %s1571_s7 = smov 120   ;;  %vm460_vm2 = vcmask 1043456  }
  0x56   : > { %1232 = vmatprep.subr.bf16.mxu1 %v1568_v0  ;;  %1234 = vmatprep.mubr.msk.bf16.mxu1 %vm1569_vm0, %v1568_v0  ;;  %v1186_v4 = vld [vmem:[%s1880_s3] ss:$0 sm:$0xff]  ;;  %s1572_s8 = smov 96   ;;  %s1573_s12 = smov 112   ;;  %vm456_vm3 = vcmask 64512   ;;  %vm1031_vm4 = vcmask 130048  }
  0x57   : > { %1225 = vmatpush3.bf16.msra.mxu0 %v1373_v1  ;;  %s1574_s27 = smov 64   ;;  %v1190_v28 = vld [vmem:[%s257_s22] ss:$0 sm:$0xff]  ;;  %s1577_s28 = smov 16   ;;  %vm1033_vm5 = vcmask 195584  }
  0x58   : > { %1226 = vmatprep.subr.bf16.mxu0 %v1568_v0  ;;  %s1578_s5 = smov 8   ;;  %s1579_s14 = smov 24  }
  0x59   : > { %s1185_s9 = sshll.u32 %s1730_s0, 3  ;;  %s1202_s26 = sshll.u32 %s1553_s18, 7 }
  0x5a   : > { %s292_s10 = scalar_lea.vmem [#allocation8], %s1185_s9  ;;  %s1834_s29 = scalar_lea.hbm %s1881_s4, %s1202_s26 }
  0x5b   : > { %1227 = vmatpush3.bf16.msra.mxu0 %v1374_v2  ;;  %s1051_s2 = sshll.u32 %s292_s10, 4  ;;  %s1037_s25 = scalar_lea.sflag [#allocation4], %s1730_s0  ;;  %s1052_s2 = int_to_ptr.vmem [resolvable:$true] %s1051_s2 }
  0x5c   : > { %1244 = vmatprep.subr.bf16.mxu0 %v1568_v0  ;;  %s1473_s22 = scalar_lea.vmem %s1052_s2, 128  ;;  %s1580_s18 = smov [#allocation8]  }
  0x5d   : > { %p1474_p1 = scmp.ne.s32.totalorder %s1052_s2, %s1473_s22  ;;  %s1477_s21 = sshll.u32 %s1580_s18, 4  ;;  %s1478_s21 = int_to_ptr.vmem [resolvable:$false] %s1477_s21 }
  0x5e   : > { %1229 = vmatmul.mubr.msk.bf16.vlgmr.msra.gmra.mxu0 %vm322_vm1, %v297_v3  ;;  %s1479_s23 = scalar_lea.vmem %s1478_s21, 256  ;;  %p1480_p5 = scmp.lt.s32.totalorder %s1052_s2, %s1478_s21 }
  0x5f   : > { %1246 = vmatprep.mubr.msk.bf16.mxu0 %vm1569_vm0, %v1568_v0  ;;  %p1475_p4 = pnand %p1474_p1, %p1689_p0  ;;  %p1481_p7 = scmp.lt.s32.totalorder %s1479_s23, %s1473_s22 }
  0x61   : > { %p1476_p8 = pneg %p1475_p4  ;;  %p1482_p2 = por %p1481_p7, %p1480_p5 }
  0x63   : > { %p1483_p6 = pnand %p1482_p2, %p1476_p8 }
 0x11e   : > { %v360_v5 = vpop.f32.mrf.mxu0 }
 0x11f   : > { %v361_v6 = vadd.f32 %v1186_v4, %v360_v5 }
 0x120   : > { %v1230_v7 = vpop.f32.mrf.mxu0 }
 0x121   : > { %v1762_v8 = vpack.c.bf16 %v361_v6, %v361_v6 }
 0x122   : > { %v363_v9 = vpop.f32.mrf.mxu0 }
 0x123   : > { %372 = vrot.lane.b32.xlu1 %v1762_v8, %s1570_s6  ;;  %368 = vrot.lane.b32.xlu0 %v1762_v8, %s1571_s7 }
 0x124   : > { %v1231_v10 = vpop.f32.mrf.mxu0 }
 0x127   : > { %380 = vrot.lane.b32.xlu1 %v1762_v8, %s1572_s8  ;;  %370 = vrot.lane.b32.xlu0 %v1762_v8, %s1573_s12 }
 0x195   : > { %v369_v11 = vpop.permute.xlu0 %368  ;;  %v1768_v12 = vpop.permute.xlu1 %372 }
 0x196   : > { %382 = vrot.lane.b32.xlu0 %v369_v11, %s1572_s8 }
 0x199   : > { %v1770_v13 = vpop.permute.xlu0 %370  ;;  %v381_v14 = vpop.permute.xlu1 %380 }
 0x19a   : > { %386 = vrot.lane.b32.xlu0 %v1768_v12, %s1572_s8  ;;  %384 = vrot.lane.b32.xlu1 %v1770_v13, %s1572_s8 }
 0x1bd   : > { %392 = vxpose.xlu1.c.b16.start.end [1/1] (short) (narrow) %v381_v14, 16 }
 0x208   : > { %v383_v15 = vpop.permute.xlu0 %382 }
 0x209   : > { %408 = vxpose.xlu0.c.b16.start.end [1/1] (short) (narrow) %v383_v15, 16 }
 0x20c   : > { %v385_v16 = vpop.permute.xlu1 %384  ;;  %v387_v17 = vpop.permute.xlu0 %386 }
 0x20d   : > { %424 = vxpose.xlu0.c.b16.start.end [1/1] (short) (narrow) %v385_v16, 16  ;;  %440 = vxpose.xlu1.c.b16.start.end [1/1] (short) (narrow) %v387_v17, 16 }
 0x211   : > { %730 = vrot.lane.b32.xlu1 %v369_v11, %s1574_s27 }
 0x21f   : > { %v400_v18 = vpop.trf.xlu1 }
 0x220   : > { %v462_v19 = vsel %vm460_vm2, %v400_v18, 0 }
 0x221   : > { %1233 = vmatpush3.bf16.msra.mxu1 %v462_v19 }
 0x222   : > { %1238 = vmatprep.subr.bf16.mxu1 %v1568_v0 }
 0x224   : > { %1235 = vmatmul.mubr.msk.bf16.vlgmr.msra.gmra.mxu1 %vm456_vm3, %v1762_v8 }
 0x225   : > { %1240 = vmatprep.mubr.msk.bf16.mxu1 %vm1569_vm0, %v1568_v0 }
 0x26b   : > { %v416_v20 = vpop.trf.xlu0 }
 0x26c   : > { %v508_v21 = vsel %vm460_vm2, %v416_v20, 0 }
 0x26d   : > { %1239 = vmatpush3.bf16.msra.mxu1 %v508_v21 }
 0x26e   : > { %1250 = vmatprep.subr.bf16.mxu1 %v1568_v0 }
 0x26f   : > { %v432_v22 = vpop.trf.xlu0  ;;  %v448_v23 = vpop.trf.xlu1 }
 0x270   : > { %v554_v24 = vsel %vm460_vm2, %v432_v22, 0  ;;  %1241 = vmatmul.mubr.msk.bf16.vlgmr.msra.gmra.mxu1 %vm456_vm3, %v369_v11  ;;  %v600_v25 = vsel %vm460_vm2, %v448_v23, 0 }
 0x271   : > { %1245 = vmatpush3.bf16.msra.mxu0 %v554_v24  ;;  %1251 = vmatpush3.bf16.msra.mxu1 %v600_v25 }
 0x272   : > { %1252 = vmatprep.mubr.msk.bf16.mxu1 %vm1569_vm0, %v1568_v0  ;;  %1262 = vmatprep.subr.bf16.mxu1 %v1568_v0 }
 0x273   : > { %1256 = vmatprep.subr.bf16.mxu0 %v1568_v0 }
 0x274   : > { %1247 = vmatmul.mubr.msk.bf16.vlgmr.msra.gmra.mxu0 %vm456_vm3, %v1770_v13 }
 0x275   : > { %1258 = vmatprep.mubr.msk.bf16.mxu0 %vm1569_vm0, %v1568_v0 }
 0x278   : > { %1253 = vmatmul.mubr.msk.bf16.vlgmr.msra.gmra.mxu1 %vm456_vm3, %v1768_v12 }
 0x279   : > { %1264 = vmatprep.mubr.msk.bf16.mxu1 %vm1569_vm0, %v1568_v0 }
 0x283   : > { %v731_v26 = vpop.permute.xlu1 %730 }
 0x284   : > { %v736_v27 = vsel %vm460_vm2, %v731_v26, 0 }
 0x285   : > { %1263 = vmatpush3.bf16.msra.mxu1 %v736_v27 }
 0x286   : > { %1274 = vmatprep.subr.bf16.mxu1 %v1568_v0 }
 0x2e4   : > { %v498_v29 = vpop.f32.mrf.mxu1 }
 0x2e5   : > { %v499_v30 = vadd.f32 %v1190_v28, %v498_v29 }
 0x2e6   : > { %v1236_v31 = vpop.f32.mrf.mxu1 }
 0x2e7   : > { %v642_v32 = vsel %vm456_vm3, %v499_v30, -inf }
 0x2e8   : > { %v501_v33 = vpop.f32.mrf.mxu1  ;;  %643 = vmax.xlane.f32.xlu0 %v642_v32 }
 0x2ea   : > { %v1237_v34 = vpop.f32.mrf.mxu1 }
 0x2fe   : > { %682 = vrot.lane.b32.xlu0 %v1762_v8, %s1574_s27 }
 0x330   : > { %v544_v35 = vpop.f32.mrf.mxu1 }
 0x331   : > { %v545_v36 = vadd.f32 %v1190_v28, %v544_v35 }
 0x332   : > { %v1242_v37 = vpop.f32.mrf.mxu1 }
 0x333   : > { %v645_v38 = vsel %vm456_vm3, %v545_v36, -inf  ;;  %v1576_v37 = vmov 1934713408  }
 0x334   : > { %646 = vmax.xlane.f32.xlu1 %v645_v38  ;;  %v547_v39 = vpop.f32.mrf.mxu1  ;;  %v590_v40 = vpop.f32.mrf.mxu0  ;;  %v917_v38 = vunpack.c.l.s4 %v1576_v37 }
 0x335   : > { %v591_v41 = vadd.f32 %v1190_v28, %v590_v40 }
 0x336   : > { %v1243_v42 = vpop.f32.mrf.mxu1  ;;  %v1248_v43 = vpop.f32.mrf.mxu0 }
 0x337   : > { %v648_v44 = vsel %vm456_vm3, %v591_v41, -inf }
 0x338   : > { %v636_v45 = vpop.f32.mrf.mxu1  ;;  %649 = vmax.xlane.f32.xlu0 %v648_v44  ;;  %v593_v46 = vpop.f32.mrf.mxu0 }
 0x339   : > { %v637_v47 = vadd.f32 %v1190_v28, %v636_v45  ;;  %v1575_v28 = vmov 1983009808  }
 0x33a   : > { %v1249_v48 = vpop.f32.mrf.mxu0  ;;  %v1254_v49 = vpop.f32.mrf.mxu1  ;;  %v885_v29 = vunpack.c.l.s4 %v1575_v28 }
 0x33b   : > { %v651_v50 = vsel %vm456_vm3, %v637_v47, -inf  ;;  %v918_v49 = vunpack.c.0.s8 %v917_v38 }
 0x33c   : > { %652 = vmax.xlane.f32.xlu1 %v651_v50  ;;  %v639_v51 = vpop.f32.mrf.mxu1  ;;  %v886_v35 = vunpack.c.0.s8 %v885_v29 }
 0x33e   : > { %v1255_v52 = vpop.f32.mrf.mxu1 }
 0x34d   : > { %778 = vrot.lane.b32.xlu1 %v1770_v13, %s1574_s27 }
 0x34e   : > { %826 = vrot.lane.b32.xlu0 %v1768_v12, %s1574_s27 }
 0x371   : > { %v644_v53 = vpop.xlane.xlu0 %643 }
 0x372   : > { %v654_v54 = vsub.f32 %v499_v30, %v644_v53  ;;  %v887_v30 = vlaneseq }
 0x374   : > { %v658_v55 = vmul.f32 1.442695, %v654_v54 }
 0x375   : > { %v683_v56 = vpop.permute.xlu0 %682 }
 0x376   : > { %1375 = vpow2.f32 %v658_v55  ;;  %v688_v57 = vsel %vm460_vm2, %v683_v56, 0 }
 0x377   : > { %1257 = vmatpush3.bf16.msra.mxu0 %v688_v57 }
 0x378   : > { %1268 = vmatprep.subr.bf16.mxu0 %v1568_v0 }
 0x383   : > { %v1376_v58 = vpop.eup %1375 }
 0x384   : > { %v666_v59 = vsel %vm456_vm3, %v1376_v58, 0.0  ;;  %v678_v60 = vpack.c.bf16 %v1376_v58, %v1376_v58 }
 0x385   : > { %667 = vadd.xlane.f32.xlu1 %v666_v59 }
 0x386   : > { %1259 = vmatmul.mubr.msk.bf16.vlgmr.msra.gmra.mxu0 %vm456_vm3, %v678_v60 }
 0x387   : > { %1270 = vmatprep.mubr.msk.bf16.mxu0 %vm1569_vm0, %v1568_v0 }
 0x3bd   : > { %v647_v61 = vpop.xlane.xlu1 %646 }
 0x3be   : > { %v655_v62 = vsub.f32 %v545_v36, %v647_v61  ;;  %v888_v36 = vshrl.u32 %v887_v30, 7 }
 0x3c0   : > { %v660_v63 = vmul.f32 1.442695, %v655_v62  ;;  %v889_v46 = vsub.s32 %v886_v35, %v888_v36  ;;  %v921_v58 = vsub.s32 %v918_v49, %v888_v36 }
 0x3c1   : > { %v650_v1 = vpop.xlane.xlu0 %649 }
 0x3c2   : > { %1377 = vpow2.f32 %v660_v63  ;;  %v656_v2 = vsub.f32 %v591_v41, %v650_v1 }
 0x3c4   : > { %v662_v3 = vmul.f32 1.442695, %v656_v2 }
 0x3c5   : > { %v653_v4 = vpop.xlane.xlu1 %652  ;;  %v827_v10 = vpop.permute.xlu0 %826 }
 0x3c6   : > { %1379 = vpow2.f32 %v662_v3  ;;  %v657_v5 = vsub.f32 %v637_v47, %v653_v4  ;;  %v832_v13 = vsel %vm460_vm2, %v827_v10, 0 }
 0x3c8   : > { %v664_v6 = vmul.f32 1.442695, %v657_v5 }
 0x3c9   : > { %v779_v7 = vpop.permute.xlu1 %778 }
 0x3ca   : > { %1381 = vpow2.f32 %v664_v6  ;;  %v784_v8 = vsel %vm460_vm2, %v779_v7, 0 }
 0x3cb   : > { %1269 = vmatpush3.bf16.msra.mxu0 %v784_v8 }
 0x3cf   : > { %v1378_v9 = vpop.eup %1377 }
 0x3d0   : > { %v669_v11 = vsel %vm456_vm3, %v1378_v9, 0.0  ;;  %v679_v12 = vpack.c.bf16 %v1378_v9, %v1378_v9 }
 0x3d1   : > { %670 = vadd.xlane.f32.xlu0 %v669_v11 }
 0x3d2   : > { %1265 = vmatmul.mubr.msk.bf16.vlgmr.msra.gmra.mxu1 %vm456_vm3, %v679_v12 }
 0x3d3   : > { %v1380_v14 = vpop.eup %1379  ;;  %1275 = vmatpush3.bf16.msra.mxu1 %v832_v13  ;;  %1276 = vmatprep.mubr.msk.bf16.mxu1 %vm1569_vm0, %v1568_v0 }
 0x3d4   : > { %v672_v15 = vsel %vm456_vm3, %v1380_v14, 0.0  ;;  %v680_v16 = vpack.c.bf16 %v1380_v14, %v1380_v14 }
 0x3d5   : > { %673 = vadd.xlane.f32.xlu0 %v672_v15 }
 0x3d6   : > { %1271 = vmatmul.mubr.msk.bf16.vlgmr.msra.gmra.mxu0 %vm456_vm3, %v680_v16 }
 0x3d7   : > { %v1382_v17 = vpop.eup %1381 }
 0x3d8   : > { %v675_v18 = vsel %vm456_vm3, %v1382_v17, 0.0  ;;  %v681_v19 = vpack.c.bf16 %v1382_v17, %v1382_v17 }
 0x3d9   : > { %676 = vadd.xlane.f32.xlu1 %v675_v18 }
 0x3da   : > { %1277 = vmatmul.mubr.msk.bf16.vlgmr.msra.gmra.mxu1 %vm456_vm3, %v681_v19 }
 0x40e   : > { %v668_v25 = vpop.xlane.xlu1 %667 }
 0x446   : > { %v724_v20 = vpop.f32.mrf.mxu0 }
 0x448   : > { %v1260_v21 = vpop.f32.mrf.mxu0 }
 0x44a   : > { %v727_v22 = vpop.f32.mrf.mxu0 }
 0x44c   : > { %v1261_v23 = vpop.f32.mrf.mxu0 }
 0x45a   : > { %v671_v24 = vpop.xlane.xlu0 %670 }
 0x45e   : > { %v674_v0 = vpop.xlane.xlu0 %673 }
 0x45f   : > { %1383 = vrcp.f32 %v674_v0 }
 0x460   : > { %1385 = vrcp.f32 %v668_v25 }
 0x461   : > { %1387 = vrcp.f32 %v671_v24 }
 0x462   : > { %v677_v26 = vpop.xlane.xlu1 %676 }
 0x463   : > { %1389 = vrcp.f32 %v677_v26 }
 0x46c   : > { %v1384_v32 = vpop.eup %1383 }
 0x46d   : > { %v1386_v40 = vpop.eup %1385 }
 0x46e   : > { %v1388_v43 = vpop.eup %1387  ;;  %v878_v44 = vmul.f32 %v1386_v40, %v724_v20 }
 0x470   : > { %v1390_v45 = vpop.eup %1389 }
 0x492   : > { %v772_v27 = vpop.f32.mrf.mxu1 }
 0x493   : > { %v879_v50 = vmul.f32 %v1388_v43, %v772_v27 }
 0x494   : > { %v1266_v31 = vpop.f32.mrf.mxu1 }
 0x496   : > { %v775_v33 = vpop.f32.mrf.mxu1  ;;  %v820_v34 = vpop.f32.mrf.mxu0 }
 0x497   : > { %v880_v39 = vmul.f32 %v1384_v32, %v820_v34 }
 0x498   : > { %v1267_v41 = vpop.f32.mrf.mxu1  ;;  %v1272_v42 = vpop.f32.mrf.mxu0 }
 0x499   : > { %v882_v51 = vcombine.low %v878_v44, %v880_v39  ;;  %v883_v52 = vcombine.high %v878_v44, %v880_v39 }
 0x49a   : > { %v823_v47 = vpop.f32.mrf.mxu0  ;;  %v868_v48 = vpop.f32.mrf.mxu1 }
 0x49b   : > { %v881_v53 = vmul.f32 %v1390_v45, %v868_v48  ;;  %v890_v60 = vrot.slane %v882_v51, %v889_v46  ;;  %v897_v61 = vrot.slane %v883_v52, %v889_v46 }
 0x49c   : > { %v1273_v54 = vpop.f32.mrf.mxu0  ;;  %v1278_v55 = vpop.f32.mrf.mxu1 }
 0x49d   : > { %v898_v56 = vcombine.low %v879_v50, %v881_v53  ;;  %v899_v57 = vcombine.high %v879_v50, %v881_v53 }
 0x49e   : > { %v871_v59 = vpop.f32.mrf.mxu1 }
 0x49f   : > { %v906_v62 = vrot.slane %v898_v56, %v889_v46  ;;  %v913_v63 = vrot.slane %v899_v57, %v889_v46 }
 0x4a0   : > { %v1279_v1 = vpop.f32.mrf.mxu1 }
 0x4a1   : > { %v914_v2 = vcombine.low %v890_v60, %v906_v62  ;;  %v915_v3 = vcombine.high %v890_v60, %v906_v62  ;;  %v930_v4 = vcombine.low %v897_v61, %v913_v63  ;;  %v931_v5 = vcombine.high %v897_v61, %v913_v63 }
 0x4a3   : > { %v922_v6 = vrot.slane %v914_v2, %v921_v58  ;;  %v929_v7 = vrot.slane %v915_v3, %v921_v58  ;;  %v938_v8 = vrot.slane %v930_v4, %v921_v58  ;;  %v945_v9 = vrot.slane %v931_v5, %v921_v58 }
 0x4a5   : > { %v950_v10 = vcombine.low %v922_v6, %v929_v7  ;;  %v1199_v11 = vcombine.high %v922_v6, %v929_v7  ;;  %v966_v12 = vcombine.low %v938_v8, %v945_v9  ;;  %v1200_v13 = vcombine.high %v938_v8, %v945_v9 }
 0x4a7   : > { %v957_v14 = vrot.slane %v950_v10, %v889_v46  ;;  %v965_v15 = vrot.slane %v1199_v11, %v889_v46  ;;  %v973_v16 = vrot.slane %v966_v12, %v889_v46  ;;  %v981_v17 = vrot.slane %v1200_v13, %v889_v46 }
 0x4a9   : > { %v983_v18 = vcombine.high %v957_v14, %v965_v15  ;;  %v999_v19 = vcombine.high %v973_v16, %v981_v17  ;;  %v982_v20 = vcombine.low %v957_v14, %v965_v15  ;;  %v998_v21 = vcombine.low %v973_v16, %v981_v17 }
 0x4ab   : > { %v997_v22 = vrot.slane %v983_v18, %v921_v58  ;;  %v1013_v23 = vrot.slane %v999_v19, %v921_v58  ;;  %v990_v24 = vrot.slane %v982_v20, %v921_v58  ;;  %v1006_v25 = vrot.slane %v998_v21, %v921_v58 }
 0x4ad   : > { %v1016_v0 = vcombine.low %v997_v22, %v1013_v23  ;;  %v1015_v26 = vcombine.high %v990_v24, %v1006_v25  ;;  %v1014_v27 = vcombine.low %v990_v24, %v1006_v25  ;;  %v1017_v28 = vcombine.high %v997_v22, %v1013_v23 }
 0x4af   : > { %1023 = vrot.lane.b32.xlu1 %v1016_v0, %s1577_s28  ;;  %1019 = vrot.lane.b32.xlu0 %v1015_v26, %s1578_s5 }
 0x4b3   : > { %1027 = vrot.lane.b32.xlu1 %v1017_v28, %s1579_s14 }
 0x521   : > { %v1024_v29 = vpop.permute.xlu1 %1023  ;;  %v1020_v30 = vpop.permute.xlu0 %1019 }
 0x522   : > { %v1030_v31 = vsel %vm456_vm3, %v1014_v27, %v1020_v30 }
 0x523   : > { %v1032_v33 = vsel %vm1031_vm4, %v1030_v31, %v1024_v29 }
 0x525   : > { %v1028_v32 = vpop.permute.xlu1 %1027 }
 0x526   : > { %v1034_v34 = vsel %vm1033_vm5, %v1032_v33, %v1028_v32 }
 0x527   : > { %1035 = vst.msk [vmem:[%s292_s10] sm:$0xff] %vm322_vm1, %v1034_v34 }
 0x528   : > { %1486 = shalt.err (!%p1483_p6)
}
 0x529   : > { %s1487_s6 = scalar_lea.hbm %s1834_s29, 128  ;;  %s1491_s8 = scalar_lea.hbm %s1881_s4, 256 }
 0x52a   : > { %p1488_p9 = scmp.ne.s32.totalorder %s1834_s29, %s1487_s6  ;;  %p1492_p11 = scmp.lt.s32.totalorder %s1834_s29, %s1881_s4 }
 0x52b   : > { %p1493_p3 = scmp.lt.s32.totalorder %s1491_s8, %s1487_s6 }
 0x52c   : > { %p1489_p12 = pnand %p1488_p9, %p1689_p0 }
 0x52d   : > { %p1494_p1 = por %p1493_p3, %p1492_p11 }
 0x52e   : > { %p1490_p13 = pneg %p1489_p12 }
 0x530   : > { %p1495_p4 = pnand %p1494_p1, %p1490_p13 }
 0x532   : > { %1498 = shalt.err (!%p1495_p4)
}
 0x533   : > { %1288 = dma.vmem_to_hbm [thread:$0]  (%p1689_p0), %s1052_s2, 128, %s1834_s29, %s1037_s25  }
 0x534 PF: > { %s1063_s28 = sand.u32 1, %s1541_s15   ;;  %p1897_p8 = scmp.ne.s32.totalorder %s1886_s24, 0 }
 0x535   : > { %s1064_s5 = scalar_lea.sflag [#allocation4], %s1063_s28 }
 0x536   : > { %p1302_p5 = pnand %p1178_p10, %p1897_p8 }
 0x538   : > { %p1303_p7 = pneg %p1302_p5 }
 0x53a   : > { %1536 = dma.done.wait (%p1303_p7), %s1064_s5, 128  }
 0x53b   : > { %1538 = vsyncadd (%p1303_p7), %s1064_s5, 4294967168  ;;  %s23_s20 = sadd.s32 1, %s1561_s20   ;;  %s1898_s11 = sld [smem:[#allocation14_spill]] }
 0x53c   : > { %p20_p2 = scmp.ge.s32.totalorder %s23_s20, 4   ;;  %s1899_s14 = sld [smem:[#allocation13_spill]] }
 0x53d   : > { %s1900_s15 = smov %s1545_s16  ;;  %s1901_s16 = smov %s1549_s17 }
 0x53e   : > { %s1903_s18 = smov %s1557_s19  ;;  %22 = sbr.rel (!%p20_p2) target bundleno = 11 (0xb), region = 102 }
 0x541   : > { %s1902_s17 = smov %s1898_s11 }
 0x542   : > { %s1904_s19 = smov %s1899_s14 }
 0x543   :  { %1069 = vsyncpa [#allocation3], 1 }
 0x544   :  { %1071 = vsyncpa [#allocation3 + $0x1], 1 }
 0x545   :  { %1072 = vsyncpa [#allocation6], 1 }
 0x546   :  { %1074 = vsyncpa [#allocation6 + $0x1], 1 }
 0x547   :  { %1075 = vsyncpa [#allocation4], 1 }
 0x548   :  { %1077 = vsyncpa [#allocation4 + $0x1], 1 }

</bundles_post_ra>
